<compile_context>
chip_gen: v7x
topology: tpu7x:2x2x1
jax: 0.10.0
libtpu: 0.0.40
codegen_flags: <defaults>
</compile_context>

<pallas_src>
import jax
import jax.numpy as jnp
from jax.experimental import pallas as pl
from jax.experimental.pallas import tpu as pltpu

OUT_PAD = 128        # lane-dense output width (real out_features is 5 or 2)
W_ROWS = 16          # sublane-aligned row budget for W_total (real rows: 10)
_BIAS_ROWS = 8       # bias stored replicated over an 8-row sublane block
PACK_ROWS = W_ROWS + _BIAS_ROWS   # 24


def _fused_kernel(x_ref, p_ref, o_ref):
    """o = x @ W_total + b_total, lane-dense on the output dim.

    x_ref : [B, in_f]         in_f = 10, unpadded (Mosaic pads K internally)
    p_ref : [PACK_ROWS, 128]  rows [0:in_f] = W_total, rows [W_ROWS:] = bias
    o_ref : [B, 128]          lane-dense; padded output lanes are exactly zero
    """
    batch, in_f = x_ref.shape
    x = x_ref[...]
    w = p_ref[:in_f, :]                                   # [in_f, 128]
    if batch <= _BIAS_ROWS:
        # Bias rows are pre-replicated -> plain sublane slice, no broadcast op.
        b = p_ref[W_ROWS:W_ROWS + batch, :]               # [B, 128]
    else:
        # Stride-0 sublane-broadcast read of the bias row.
        b = p_ref[pl.ds(W_ROWS, batch, stride=0), :]      # [B, 128]
    out = jnp.dot(x, w, preferred_element_type=jnp.float32) + b
    o_ref[...] = out.astype(o_ref.dtype)


@jax.jit
def _call_kernel(x, pack):
    batch, in_f = x.shape
    # Advisory cost estimate (kernel-visible math; it is tiny either way).
    flops = 2 * batch * in_f * OUT_PAD + batch * OUT_PAD
    bytes_accessed = 4 * (x.size + pack.size + batch * OUT_PAD)
    vmem = pl.BlockSpec(memory_space=pltpu.MemorySpace.VMEM)
    # TODO(synk): if batch grows to thousands of rows, add a batch grid
    # (grid=(pl.cdiv(B, TILE_B),), dimension_semantics=("parallel",)) with
    # TILE_B a multiple of 256 on v6e/v7x (512-2048) or 128 on v5e, tiles
    # sized against v7x's 64 MiB physical / 32 MiB scoped VMEM, and bf16
    # weights (preferred_element_type=f32) once the kernel is memory-bound.
    return pl.pallas_call(
        _fused_kernel,
        out_shape=jax.ShapeDtypeStruct((batch, OUT_PAD), jnp.float32),
        in_specs=[vmem, vmem],
        out_specs=vmem,
        cost_estimate=pl.CostEstimate(
            flops=flops, transcendentals=0, bytes_accessed=bytes_accessed),
    )(x, pack)


# ---------------------------------------------------------------------------
# Parameter construction / folding / packing (one-time, outside the hot path).
# ---------------------------------------------------------------------------
def init_params(key):
    """Deterministic synthetic parameters matching ConditionalLoRAModel.__init__.
    Linear weights are PyTorch-style [out_features, in_features]."""
    ks = jax.random.split(key, 10)

    def lin(k, out_f, in_f):
        return jax.random.normal(k, (out_f, in_f), jnp.float32) * 0.1

    return {
        "fc0_w": lin(ks[0], 20, 10),
        "fc0_b": jax.random.normal(ks[1], (1, 20), jnp.float32) * 0.1,
        "fc1_w": lin(ks[2], 5, 20),
        "fc1_b": jax.random.normal(ks[3], (1, 5), jnp.float32) * 0.1,
        "fc2_w": lin(ks[4], 2, 20),
        "fc2_b": jax.random.normal(ks[5], (1, 2), jnp.float32) * 0.1,
        # LoRAAdapter(20, 5, rank=4): Linear(20->4, no bias), Linear(4->5, no bias)
        "lora1_a": lin(ks[6], 4, 20),
        "lora1_b": lin(ks[7], 5, 4),
        # LoRAAdapter(20, 2, rank=4)
        "lora2_a": lin(ks[8], 4, 20),
        "lora2_b": lin(ks[9], 2, 4),
    }


def _fold_and_pack(fc0_w, fc0_b, fc_w, fc_b, lora_a, lora_b):
    """Fold fc0 + (fc_k + LoRA_k) into one affine map and pack it lane-dense."""
    # W_eff = W + LB @ LA  (exact: spec LoRAAdapter has no scaling / dropout).
    w_eff = fc_w + lora_b @ lora_a                         # [out_f, 20]
    # Full affine fold (no activation between layers in the spec module).
    w_total = fc0_w.T @ w_eff.T                            # [10, out_f]
    b_total = fc0_b @ w_eff.T + fc_b                       # [1,  out_f]
    in_f, out_f = w_total.shape
    pack = jnp.zeros((PACK_ROWS, OUT_PAD), jnp.float32)
    pack = pack.at[:in_f, :out_f].set(w_total)
    pack = pack.at[W_ROWS:, :out_f].set(
        jnp.broadcast_to(b_total, (_BIAS_ROWS, out_f)))
    return pack


def pack_params(params):
    return {
        "adapter1": _fold_and_pack(params["fc0_w"], params["fc0_b"],
                                   params["fc1_w"], params["fc1_b"],
                                   params["lora1_a"], params["lora1_b"]),
        "adapter2": _fold_and_pack(params["fc0_w"], params["fc0_b"],
                                   params["fc2_w"], params["fc2_b"],
                                   params["lora2_a"], params["lora2_b"]),
    }


def conditional_lora_forward(x, packed, adapter_number, *, lane_dense=False):
    """Mirrors ConditionalLoRAModel.forward(x, adapter_number)."""
    if adapter_number == 1:
        out, out_f = _call_kernel(x, packed["adapter1"]), 5
    elif adapter_number == 2:
        out, out_f = _call_kernel(x, packed["adapter2"]), 2
    else:
        raise ValueError("adapter_number not valid")
    if lane_dense:
        return out            # keep the [B, 128] slab for on-device consumers
    return out[:, :out_f]     # module-faithful shape, sliced at final use site


def _reference_forward(x, params, adapter_number):
    """Pure-JAX reference of the original (un-folded) PyTorch forward."""
    h = x @ params["fc0_w"].T + params["fc0_b"]
    if adapter_number == 1:
        base = h @ params["fc1_w"].T + params["fc1_b"]
        lora = (h @ params["lora1_a"].T) @ params["lora1_b"].T
    else:
        base = h @ params["fc2_w"].T + params["fc2_b"]
        lora = (h @ params["lora2_a"].T) @ params["lora2_b"].T
    return base + lora


if __name__ == "__main__":
    key = jax.random.PRNGKey(0)
    pkey, xkey = jax.random.split(key)
    params = init_params(pkey)
    packed = pack_params(params)

    batch = 8
    x = jax.random.normal(xkey, (batch, 10), jnp.float32)

    out1 = conditional_lora_forward(x, packed, adapter_number=1)
    out2 = conditional_lora_forward(x, packed, adapter_number=2)
    jax.block_until_ready((out1, out2))

    ref1 = _reference_forward(x, params, 1)
    ref2 = _reference_forward(x, params, 2)
    assert out1.shape == (batch, 5), out1.shape
    assert out2.shape == (batch, 2), out2.shape
    assert jnp.allclose(out1, ref1, atol=1e-5, rtol=1e-4), \
        float(jnp.max(jnp.abs(out1 - ref1)))
    assert jnp.allclose(out2, ref2, atol=1e-5, rtol=1e-4), \
        float(jnp.max(jnp.abs(out2 - ref2)))

    # Lane-dense path: padded output lanes must be exactly zero.
    dense1 = conditional_lora_forward(x, packed, adapter_number=1,
                                      lane_dense=True)
    assert dense1.shape == (batch, OUT_PAD)
    assert bool(jnp.all(dense1[:, 5:] == 0.0))

    # The invalid-adapter path must still raise, like the PyTorch module.
    try:
        conditional_lora_forward(x, packed, adapter_number=3)
        raise AssertionError("expected ValueError for invalid adapter_number")
    except ValueError:
        pass

    print("KERNEL_OK")
</pallas_src>

<mosaic_0001>
module attributes {stable_mosaic.version = 11 : i64} {
  func.func @_fused_kernel(%arg0: memref<8x10xf32, #tpu.memory_space<vmem>>, %arg1: memref<24x128xf32, #tpu.memory_space<vmem>>, %arg2: memref<8x128xf32, #tpu.memory_space<vmem>>) attributes {dimension_semantics = [], scalar_prefetch = 0 : i64, scratch_operands = 0 : i64, tpu.core_type = #tpu.core_type<tc>} {
    %c0 = arith.constant 0 : index
    %c0_0 = arith.constant 0 : index
    %0 = vector.load %arg0[%c0, %c0_0] : memref<8x10xf32, #tpu.memory_space<vmem>>, vector<8x10xf32>
    %c0_1 = arith.constant 0 : index
    %c0_2 = arith.constant 0 : index
    %1 = vector.load %arg1[%c0_1, %c0_2] : memref<24x128xf32, #tpu.memory_space<vmem>>, vector<10x128xf32>
    %c16 = arith.constant 16 : index
    %c0_3 = arith.constant 0 : index
    %2 = vector.load %arg1[%c16, %c0_3] : memref<24x128xf32, #tpu.memory_space<vmem>>, vector<8x128xf32>
    %cst = arith.constant dense<0.000000e+00> : vector<8x128xf32>
    %3 = tpu.matmul %0, %1, %cst {dimension_numbers = #tpu.dot_dimension_numbers<[1], [0], [0], [1], [0, 0, 1, 1], [], []>} : vector<8x10xf32>, vector<10x128xf32>, vector<8x128xf32> -> vector<8x128xf32>
    %4 = arith.addf %3, %2 : vector<8x128xf32>
    %c0_4 = arith.constant 0 : index
    %c0_5 = arith.constant 0 : index
    %5 = vector.load %arg2[%c0_4, %c0_5] : memref<8x128xf32, #tpu.memory_space<vmem>>, vector<8x128xf32>
    tpu.vector_store %arg2[%c0_4, %c0_5], %4 {strides = array<i32>} : memref<8x128xf32, #tpu.memory_space<vmem>>, vector<8x128xf32>,
    return
  }
}

</mosaic_0001>

<bundles_post_ra>
// kernel: _call_kernel.1
= control target key start
LH: loop header
LB: loop body
LE: loop exit
PB: predicated region body
PF: predicated region fallthrough
CT: control target
= control target key end

     0   :  { %7 = vsyncpa [#allocation3], 0  ;;  %s301_s0 = inlined_call_operand.hbm [shape: f32[8,10], index: 0, kind: input, shape index: {}]   ;;  %s302_s1 = inlined_call_operand.hbm [shape: f32[24,128], index: 1, kind: input, shape index: {}]   ;;  %s303_s2 = inlined_call_operand.hbm [shape: f32[8,128], index: 2, kind: output, shape index: {}]  }
   0x1   :  { %8 = vsyncpa [#allocation6], 0 }
   0x2   :  { %9 = vsyncpa [#allocation4], 0  ;;  %s234_s9 = smov [#allocation2]   ;;  %s235_s11 = smov [#allocation5]  }
   0x3   :  { %s16_s10 = sshll.u32 %s234_s9, 4  ;;  %s25_s12 = sshll.u32 %s235_s11, 4  ;;  %s17_s10 = int_to_ptr.vmem [resolvable:$true] %s16_s10  ;;  %s258_s12 = int_to_ptr.vmem [resolvable:$true] %s25_s12 }
   0x4   :  { %s162_s15 = scalar_lea.hbm %s301_s0, 128 }
   0x5   :  { %p163_p0 = scmp.ne.s32.totalorder %s301_s0, %s162_s15  ;;  %p166_p1 = scmp.lt.u32.totalorder %s162_s15, %s301_s0 }
   0x7   :  { %p168_p2 = pnand %p166_p1, %p163_p0 }
   0x9   :  { %171 = shalt.err (!%p168_p2)
}
   0xa   :  { %s172_s20 = scalar_lea.vmem %s17_s10, 128  ;;  %p177_p4 = scmp.lt.s32.totalorder %s17_s10, %s17_s10 }
   0xb   :  { %p173_p3 = scmp.ne.s32.totalorder %s17_s10, %s172_s20  ;;  %p178_p5 = scmp.lt.s32.totalorder %s172_s20, %s172_s20 }
   0xd   :  { %p179_p6 = por %p178_p5, %p177_p4 }
   0xf   :  { %p180_p7 = pnand %p179_p6, %p173_p3 }
  0x11   :  { %183 = shalt.err (!%p180_p7)
}
  0x12   :  { %19 = dma.hbm_to_vmem [thread:$0]  %s301_s0, 128, %s17_s10, [#allocation3]  }
  0x13   :  { %s184_s25 = scalar_lea.hbm %s302_s1, 384 }
  0x14   :  { %p185_p8 = scmp.ne.s32.totalorder %s302_s1, %s184_s25  ;;  %p188_p9 = scmp.lt.u32.totalorder %s184_s25, %s302_s1 }
  0x16   :  { %p190_p10 = pnand %p188_p9, %p185_p8 }
  0x18   :  { %193 = shalt.err (!%p190_p10)
}
  0x19   :  { %s194_s30 = scalar_lea.vmem %s258_s12, 384  ;;  %p199_p12 = scmp.lt.s32.totalorder %s258_s12, %s258_s12 }
  0x1a   :  { %p195_p11 = scmp.ne.s32.totalorder %s258_s12, %s194_s30  ;;  %p200_p13 = scmp.lt.s32.totalorder %s194_s30, %s194_s30 }
  0x1c   :  { %p201_p0 = por %p200_p13, %p199_p12 }
  0x1e   :  { %p202_p1 = pnand %p201_p0, %p195_p11 }
  0x20   :  { %205 = shalt.err (!%p202_p1)
}
  0x21   :  { %s236_s0 = smov 128   ;;  %s237_s3 = smov 8  }
  0x22   :  { %31 = dma.hbm_to_vmem [thread:$0]  %s302_s1, 384, %s258_s12, [#allocation6], %s236_s0, %s236_s0, %s237_s3  }
  0x23   :  { %228 = dma.done.wait [#allocation3], 128  }
  0x24   :  { %229 = vsyncadd [#allocation3], 4294967168 }
  0x25   :  { %230 = dma.done.wait [#allocation6], 384  }
  0x26   :  { %231 = vsyncadd [#allocation6], 4294966912  ;;  %v238_v0 = vmov 0.0|0.0   ;;  %vm239_vm0 = vmmov 0   ;;  %v240_v1 = vmov 0.0   ;;  %vm46_vm1 = vcmask 1041408  }
  0x27   :  { %149 = vmatprep.subr.bf16.mxu0 %v238_v0  ;;  %146 = vmatprep.mubr.msk.f32.mxu0 %vm239_vm0, %v240_v1  ;;  %v39_v2 = vld [vmem:[#allocation5] sm:$0xff]  ;;  %v40_v3 = vld [vmem:[#allocation5 + $0x8] sm:$0x3]  ;;  %vm241_vm2 = vmmov 1   ;;  %v38_v5 = vld [vmem:[#allocation2] sm:$0xff]  ;;  %vm42_vm4 = vcmask 80896  }
  0x28   :  { %vm151_vm3 = vmpackc.low %vm46_vm1, %vm241_vm2  ;;  %v150_v4 = vpack.c.bf16 %v40_v3, %v39_v2  ;;  %v41_v6 = vld [vmem:[#allocation5 + $0x10] sm:$0xff]  ;;  %s242_s1 = smov [#allocation7]  }
  0x29   :  { %s127_s6 = sshll.u32 %s242_s1, 4  ;;  %s128_s6 = int_to_ptr.vmem [resolvable:$true] %s127_s6 }
  0x2a   :  { %152 = vmatpush3.bf16.msk.msra.mxu0 %vm151_vm3, %v150_v4  ;;  %s206_s7 = scalar_lea.vmem %s128_s6, 128  ;;  %p211_p3 = scmp.lt.s32.totalorder %s128_s6, %s128_s6 }
  0x2b   :  { %p207_p2 = scmp.ne.s32.totalorder %s128_s6, %s206_s7  ;;  %p212_p4 = scmp.lt.s32.totalorder %s206_s7, %s206_s7 }
  0x2d   :  { %147 = vmatmul.mubr.msk.f32.vlgmr.msra.gmra.mrb[0].mxu0 %vm42_vm4, %v38_v5  ;;  %p213_p5 = por %p212_p4, %p211_p3 }
  0x2f   :  { %p214_p6 = pnand %p213_p5, %p207_p2 }
 0x100   :  { %v116_v7 = vpop.f32.mrb[0].mxu0 }
 0x101   :  { %v117_v8 = vadd.f32 %v116_v7, %v41_v6  ;;  %v148_v9 = vpop.f32.mrb[1].mxu0 }
 0x103   :  { %120 = vst [vmem:[#allocation7] sm:$0xff] %v117_v8 }
 0x104   :  { %217 = shalt.err (!%p214_p6)
}
 0x105   :  { %s218_s10 = scalar_lea.hbm %s303_s2, 128 }
 0x106   :  { %p219_p7 = scmp.ne.s32.totalorder %s303_s2, %s218_s10  ;;  %p222_p8 = scmp.lt.u32.totalorder %s218_s10, %s303_s2 }
 0x108   :  { %p224_p9 = pnand %p222_p8, %p219_p7 }
 0x10a   :  { %227 = shalt.err (!%p224_p9)
}
 0x10b   :  { %130 = dma.vmem_to_hbm [thread:$0]  %s128_s6, 128, %s303_s2, [#allocation4]  }
 0x10c   :  { %232 = dma.done.wait [#allocation4], 128  }
 0x10d   :  { %233 = vsyncadd [#allocation4], 4294967168 }
 0x10e   :  { %134 = vsyncpa [#allocation3], 1 }
 0x10f   :  { %135 = vsyncpa [#allocation6], 1 }
 0x110   :  { %136 = vsyncpa [#allocation4], 1 }

</bundles_post_ra>
